<compile_context>
chip_gen: v7x
topology: tpu7x:2x2x1
jax: 0.10.0
libtpu: 0.0.40
codegen_flags: <defaults>
</compile_context>

<pallas_src>
import math
from functools import partial

import jax
import jax.numpy as jnp
from jax.experimental import pallas as pl
from jax.experimental.pallas import tpu as pltpu


def _round_up(a, m):
    return (a + m - 1) // m * m


def _vmem_limit_bytes():
    cap = 64 * 1024 * 1024                     # conservative default (v7x physical)
    try:
        info = pltpu.get_tpu_info()
        cap = int(getattr(info, "vmem_capacity_bytes", cap))
    except Exception:
        pass
    # ~75% of physical, capped: v5e/v6e (128 MiB) -> 96 MiB, v7x (64 MiB) -> 48 MiB.
    return max(32 * 1024 * 1024, min(cap * 3 // 4, 100 * 1024 * 1024))


def _pick_tiles(M, Cout, B):
    CoutP = _round_up(Cout, 128)               # lane-dense output stores
    tn = 256 if CoutP % 256 == 0 else 128
    tm = _round_up(M, 16) if M <= 1024 else 512
    # Guarantee >= 2 parallel grid blocks when cheap (megacore / 2-TC v7x chips).
    while tm > 16 and B * (-(-M // tm)) * (CoutP // tn) < 2:
        tm = max(16, ((tm // 2 + 15) // 16) * 16)
    return tm, tn, CoutP


# ----------------------------------------------------------------------------
# Kernel A: packed (im2col) path — plain tiled matmul with fused bias
# ----------------------------------------------------------------------------
def _mm_bias_kernel(x_ref, w_ref, b_ref, o_ref):
    acc = jnp.dot(x_ref[0], w_ref[...], preferred_element_type=jnp.float32)
    o_ref[0] = (acc + b_ref[...]).astype(o_ref.dtype)


# ----------------------------------------------------------------------------
# Kernel B: tap-folded path — static tap loop, value accumulation, fused bias
# ----------------------------------------------------------------------------
def _conv_tap_kernel(x_ref, w_ref, b_ref, o_ref, *, taps, tm):
    row0 = pl.multiple_of(pl.program_id(1) * tm, 8)
    acc = None
    for t, (phase, off) in enumerate(taps):
        xt = x_ref[0, phase, pl.ds(row0 + off, tm), :]          # (tm, Kp) bf16
        part = jnp.dot(xt, w_ref[t], preferred_element_type=jnp.float32)
        acc = part if acc is None else acc + part               # value accum, no acc_ref RMW
    o_ref[0] = (acc + b_ref[...]).astype(o_ref.dtype)


# ----------------------------------------------------------------------------
# Path A wrapper: small Cin -> pack taps into the K axis
# ----------------------------------------------------------------------------
def _conv_packed(xh, w, b, s, p, Ho, Wo, cost, vmem):
    B, H, W, Cin = xh.shape
    Cout, _, kh, kw = w.shape

    xp = jnp.pad(xh, ((0, 0), (p, p), (p, p), (0, 0)))
    cols = [xp[:, ki:ki + (Ho - 1) * s + 1:s, kj:kj + (Wo - 1) * s + 1:s, :]
            for ki in range(kh) for kj in range(kw)]
    K = kh * kw * Cin
    M = Ho * Wo
    xcol = jnp.concatenate(cols, axis=-1).reshape(B, M, K)      # (B, Ho*Wo, kh*kw*Cin)

    tm, tn, CoutP = _pick_tiles(M, Cout, B)
    Mo = _round_up(M, tm)
    if Mo != M:
        xcol = jnp.pad(xcol, ((0, 0), (0, Mo - M), (0, 0)))

    # weight (Cout,Cin,kh,kw) -> (kh,kw,Cin,Cout) -> (K, Cout): matches the tap-major,
    # channel-minor K ordering of the concatenated patches above.
    wt = jnp.transpose(w, (2, 3, 1, 0)).reshape(K, Cout).astype(jnp.bfloat16)
    wt = jnp.pad(wt, ((0, 0), (0, CoutP - Cout)))
    bt = jnp.pad(b.astype(jnp.float32), (0, CoutP - Cout)).reshape(1, CoutP)

    grid = (B, Mo // tm, CoutP // tn)
    out = pl.pallas_call(
        _mm_bias_kernel,
        out_shape=jax.ShapeDtypeStruct((B, Mo, CoutP), jnp.float32),
        grid_spec=pltpu.PrefetchScalarGridSpec(
            num_scalar_prefetch=0,
            grid=grid,
            in_specs=[
                pl.BlockSpec((1, tm, K), lambda bi, mi, ni: (bi, mi, 0)),
                pl.BlockSpec((K, tn), lambda bi, mi, ni: (0, ni)),
                pl.BlockSpec((1, tn), lambda bi, mi, ni: (0, ni)),
            ],
            out_specs=pl.BlockSpec((1, tm, tn), lambda bi, mi, ni: (bi, mi, ni)),
        ),
        compiler_params=pltpu.CompilerParams(
            dimension_semantics=("parallel", "parallel", "parallel"),
            vmem_limit_bytes=vmem,
        ),
        cost_estimate=cost,
    )(xcol, wt, bt)

    y = out[:, :M, :Cout].reshape(B, Ho, Wo, Cout)
    return jnp.transpose(y, (0, 3, 1, 2))


# ----------------------------------------------------------------------------
# Path B wrapper: deep Cin -> stride-phase planes + tap-folded kernel
# ----------------------------------------------------------------------------
def _conv_taps(xh, w, b, s, p, Ho, Wo, cost, vmem):
    B, H, W, Cin = xh.shape
    Cout, _, kh, kw = w.shape
    Hp, Wp = H + 2 * p, W + 2 * p
    Hq, Wq = -(-Hp // s), -(-Wp // s)           # stride-phase plane extents
    Wq = _round_up(Wq, 8)                       # sublane-aligned flattened row pitch
    Msp = Hq * Wq

    tm, tn, CoutP = _pick_tiles(Msp, Cout, B)
    Mo = _round_up(Msp, tm)
    dmax = ((kh - 1) // s) * Wq + (kw - 1) // s  # largest static per-tap row offset
    Mp = _round_up(Mo + dmax, 8)                 # plane rows incl. zero halo tail
    Kp = _round_up(Cin, 128)                     # lane-dense channel axis

    # Single spatial pad (PyTorch zero padding + phase/pitch tail), then one
    # phase-decomposition reshape (skipped when stride == 1).
    xq = jnp.pad(xh, ((0, 0), (p, Hq * s - H - p), (p, Wq * s - W - p), (0, 0)))
    if s == 1:
        xq = xq.reshape(B, 1, Hq * Wq, Cin)
    else:
        xq = (xq.reshape(B, Hq, s, Wq, s, Cin)
                .transpose(0, 2, 4, 1, 3, 5)
                .reshape(B, s * s, Hq * Wq, Cin))
    # One pad for the M halo tail + channel lanes.
    xq = jnp.pad(xq, ((0, 0), (0, 0), (0, Mp - Msp), (0, Kp - Cin)))

    wt = jnp.transpose(w, (2, 3, 1, 0)).reshape(kh * kw, Cin, Cout).astype(jnp.bfloat16)
    wt = jnp.pad(wt, ((0, 0), (0, Kp - Cin), (0, CoutP - Cout)))
    bt = jnp.pad(b.astype(jnp.float32), (0, CoutP - Cout)).reshape(1, CoutP)

    # Tap (ki, kj) of output pixel (ho, wo) reads phase plane (ki%s, kj%s) at
    # flattened row (ho + ki//s)*Wq + (wo + kj//s) = out_row + off (off static;
    # its row-pitch component is a multiple of 8).
    taps = tuple(((ki % s) * s + (kj % s), (ki // s) * Wq + (kj // s))
                 for ki in range(kh) for kj in range(kw))

    grid = (B, Mo // tm, CoutP // tn)
    out = pl.pallas_call(
        partial(_conv_tap_kernel, taps=taps, tm=tm),
        out_shape=jax.ShapeDtypeStruct((B, Mo, CoutP), jnp.float32),
        grid_spec=pltpu.PrefetchScalarGridSpec(
            num_scalar_prefetch=0,
            grid=grid,
            in_specs=[
                # Full-K, whole (padded, phase-split) image of one batch: the block
                # index only depends on bi, so it is DMA'd once per image and stays
                # resident across all M/N tiles (no per-K-step re-fetch).
                # TODO(synk): spatially tile this block (halo DMA) and single-buffer
                # it for very large feature maps on v7x's 64 MiB VMEM.
                pl.BlockSpec((1, s * s, Mp, Kp), lambda bi, mi, ni: (bi, 0, 0, 0)),
                pl.BlockSpec((kh * kw, Kp, tn), lambda bi, mi, ni: (0, 0, ni)),
                pl.BlockSpec((1, tn), lambda bi, mi, ni: (0, ni)),
            ],
            out_specs=pl.BlockSpec((1, tm, tn), lambda bi, mi, ni: (bi, mi, ni)),
        ),
        compiler_params=pltpu.CompilerParams(
            dimension_semantics=("parallel", "parallel", "parallel"),
            vmem_limit_bytes=vmem,
        ),
        cost_estimate=cost,
    )(xq, wt, bt)

    y = out[:, :Msp, :Cout].reshape(B, Hq, Wq, Cout)[:, :Ho, :Wo, :]
    return jnp.transpose(y, (0, 3, 1, 2))


# ----------------------------------------------------------------------------
# ConvLayer.forward equivalent
# ----------------------------------------------------------------------------
def conv2d(x, w, b, stride, padding):
    """PyTorch nn.Conv2d forward.
    x: (B, Cin, H, W) f32, w: (Cout, Cin, kh, kw) f32, b: (Cout,) f32
    -> (B, Cout, Ho, Wo) f32 (NCHW, like the PyTorch module)."""
    B, Cin, H, W = x.shape
    Cout, _, kh, kw = w.shape
    s, p = int(stride), int(padding)
    Ho = (H + 2 * p - kh) // s + 1
    Wo = (W + 2 * p - kw) // s + 1

    cost = pl.CostEstimate(
        flops=2 * B * Ho * Wo * Cout * Cin * kh * kw,
        transcendentals=0,
        bytes_accessed=(x.size + w.size + b.size + B * Ho * Wo * Cout) * 4,
    )
    vmem = _vmem_limit_bytes()

    # Single NCHW -> NHWC boundary transpose, bf16 operands (f32 MXU accumulation).
    xh = jnp.transpose(x, (0, 2, 3, 1)).astype(jnp.bfloat16)

    if Cin * kh * kw <= 1024:                        # small-Cin: pack taps into K
        return _conv_packed(xh, w, b, s, p, Ho, Wo, cost, vmem)
    return _conv_taps(xh, w, b, s, p, Ho, Wo, cost, vmem)


# ----------------------------------------------------------------------------
# Pure-JAX reference (for correctness check)
# ----------------------------------------------------------------------------
def conv2d_ref(x, w, b, stride, padding):
    y = jax.lax.conv_general_dilated(
        x, w,
        window_strides=(stride, stride),
        padding=((padding, padding), (padding, padding)),
        dimension_numbers=("NCHW", "OIHW", "NCHW"),
        precision=jax.lax.Precision.HIGHEST)
    return y + b[None, :, None, None]


# ----------------------------------------------------------------------------
if __name__ == "__main__":
    conv_fwd = jax.jit(conv2d, static_argnums=(3, 4))

    key = jax.random.PRNGKey(0)
    configs = [
        # (in_channels, out_channels, kernel_size, stride, padding, H=W)
        (4, 16, 3, 1, 1, 16),     # primary case: x = (2, 4, 16, 16)   -> packed path
        (3, 32, 7, 4, 3, 16),     # strided patch-embed-style case      -> packed path
        (128, 64, 3, 1, 1, 16),   # deep-Cin case                       -> tap path
    ]
    for cin, cout, ksz, stride, pad, hw in configs:
        key, kx, kw_, kb = jax.random.split(key, 4)
        x = jax.random.normal(kx, (2, cin, hw, hw), jnp.float32)
        bound = 1.0 / math.sqrt(cin * ksz * ksz)      # PyTorch default conv init range
        w = jax.random.uniform(kw_, (cout, cin, ksz, ksz), jnp.float32, -bound, bound)
        b = jax.random.uniform(kb, (cout,), jnp.float32, -bound, bound)

        y = jax.block_until_ready(conv_fwd(x, w, b, stride, pad))
        y_ref = conv2d_ref(x, w, b, stride, pad)

        assert y.shape == y_ref.shape, (y.shape, y_ref.shape)
        assert bool(jnp.all(jnp.isfinite(y)))
        err = float(jnp.max(jnp.abs(y - y_ref)) / (jnp.max(jnp.abs(y_ref)) + 1e-6))
        assert err < 5e-2, f"mismatch vs reference: normalized max err = {err}"

    print("KERNEL_OK")
</pallas_src>

<mosaic_0001>
module attributes {stable_mosaic.version = 11 : i64} {
  func.func @_mm_bias_kernel(%arg0: i32, %arg1: i32, %arg2: i32, %arg3: memref<1x256x36xbf16, #tpu.memory_space<vmem>>, %arg4: memref<36x128xbf16, #tpu.memory_space<vmem>>, %arg5: memref<1x128xf32, #tpu.memory_space<vmem>>, %arg6: memref<1x256x128xf32, #tpu.memory_space<vmem>>) attributes {dimension_semantics = [#tpu.dimension_semantics<parallel>, #tpu.dimension_semantics<parallel>, #tpu.dimension_semantics<parallel>], iteration_bounds = array<i64: 2, 1, 1>, scalar_prefetch = 0 : i64, scratch_operands = 0 : i64, tpu.core_type = #tpu.core_type<tc>, window_params = [{transform_indices = @transform_0, window_bounds = array<i64: 1, 256, 36>}, {transform_indices = @transform_1, window_bounds = array<i64: 36, 128>}, {transform_indices = @transform_2, window_bounds = array<i64: 1, 128>}, {transform_indices = @transform_3, window_bounds = array<i64: 1, 256, 128>}]} {
    %c0 = arith.constant 0 : index
    %c0_0 = arith.constant 0 : index
    %c0_1 = arith.constant 0 : index
    %0 = vector.load %arg3[%c0, %c0_0, %c0_1] : memref<1x256x36xbf16, #tpu.memory_space<vmem>>, vector<1x256x36xbf16>
    %1 = vector.shape_cast %0 : vector<1x256x36xbf16> to vector<256x36xbf16>
    %c0_2 = arith.constant 0 : index
    %c0_3 = arith.constant 0 : index
    %2 = vector.load %arg4[%c0_2, %c0_3] : memref<36x128xbf16, #tpu.memory_space<vmem>>, vector<36x128xbf16>
    %cst = arith.constant dense<0.000000e+00> : vector<256x128xf32>
    %3 = tpu.matmul %1, %2, %cst {dimension_numbers = #tpu.dot_dimension_numbers<[1], [0], [0], [1], [0, 0, 1, 1], [], []>} : vector<256x36xbf16>, vector<36x128xbf16>, vector<256x128xf32> -> vector<256x128xf32>
    %c0_4 = arith.constant 0 : index
    %c0_5 = arith.constant 0 : index
    %4 = vector.load %arg5[%c0_4, %c0_5] : memref<1x128xf32, #tpu.memory_space<vmem>>, vector<1x128xf32>
    %5 = vector.broadcast %4 : vector<1x128xf32> to vector<256x128xf32>
    %6 = arith.addf %3, %5 : vector<256x128xf32>
    %c0_6 = arith.constant 0 : index
    %c0_7 = arith.constant 0 : index
    %c0_8 = arith.constant 0 : index
    %7 = vector.load %arg6[%c0_6, %c0_7, %c0_8] : memref<1x256x128xf32, #tpu.memory_space<vmem>>, vector<1x256x128xf32>
    %8 = vector.shape_cast %7 : vector<1x256x128xf32> to vector<256x128xf32>
    %9 = vector.shape_cast %6 : vector<256x128xf32> to vector<1x256x128xf32>
    tpu.vector_store %arg6[%c0_6, %c0_7, %c0_8], %9 {strides = array<i32>} : memref<1x256x128xf32, #tpu.memory_space<vmem>>, vector<1x256x128xf32>,
    return
  }
  func.func @transform_0(%arg0: i32, %arg1: i32, %arg2: i32) -> (i32, i32, i32) {
    %c0_i32 = arith.constant 0 : i32
    %c0_i32_0 = arith.constant 0 : i32
    return %arg0, %arg1, %c0_i32 : i32, i32, i32
  }
  func.func @transform_1(%arg0: i32, %arg1: i32, %arg2: i32) -> (i32, i32) {
    %c0_i32 = arith.constant 0 : i32
    %c0_i32_0 = arith.constant 0 : i32
    return %c0_i32, %arg2 : i32, i32
  }
  func.func @transform_2(%arg0: i32, %arg1: i32, %arg2: i32) -> (i32, i32) {
    %c0_i32 = arith.constant 0 : i32
    %c0_i32_0 = arith.constant 0 : i32
    return %c0_i32, %arg2 : i32, i32
  }
  func.func @transform_3(%arg0: i32, %arg1: i32, %arg2: i32) -> (i32, i32, i32) {
    %c0_i32 = arith.constant 0 : i32
    return %arg0, %arg1, %arg2 : i32, i32, i32
  }
}

</mosaic_0001>

<bundles_post_ra>
// kernel: conv2d.1
= control target key start
LH: loop header
LB: loop body
LE: loop exit
PB: predicated region body
PF: predicated region fallthrough
CT: control target
= control target key end

     0   :  { %s972_s12 = smov 0   ;;  %s974_s13 = smov 0   ;;  %s1123_s0 = inlined_call_operand.vmem [shape: bf16[2,256,36], index: 0, kind: input, shape index: {}]   ;;  %s1124_s1 = inlined_call_operand.vmem [shape: bf16[36,128], index: 1, kind: input, shape index: {}]   ;;  %s1125_s2 = inlined_call_operand.vmem [shape: f32[1,128], index: 2, kind: input, shape index: {}]   ;;  %s1126_s3 = inlined_call_operand.vmem [shape: f32[2,256,128], index: 3, kind: output, shape index: {}]  }
   0x1   :  { %s976_s14 = smov 0  }
   0x2 LB: > { %s32_s15 = sadd.s32 1, %s946_s13  ;;  %p775_p0 = scmp.ge.s32.totalorder %s950_s14, 1  ;;  %s950_s14 = sphi %s976_s14, %s13_s14   ;;  %s946_s13 = sphi %s974_s13, %s1128_s13   ;;  %s942_s12 = sphi %s972_s12, %s1127_s12  }
   0x3   : > { %p34_p1 = scmp.ge.s32.totalorder %s32_s15, 2  ;;  %p184_p2 = scmp.lt.s32.totalorder %s950_s14, 3 }
   0x5   : > { %s1130_s15 = smov (%p34_p1, %s32_s15), 0  ;;  %p185_p3 = pnand %p775_p0, %p184_p2 }
   0x6   : > { %v909_v0 = vld [vmem:[%s1124_s1] sm:$0xff] (!%p185_p3)   ;;  %v910_v1 = vld [vmem:[%s1124_s1 + $0x8] sm:$0xff] (!%p185_p3)   ;;  %p227_p4 = scmp.lt.s32.totalorder (!%p185_p3), %s942_s12, 1  ;;  %v911_v2 = vld [vmem:[%s1124_s1 + $0x10] ss:$0 sps:$4 sm:$0x33] (!%p185_p3)  }
   0x7   : > { %188 = sbr.rel (%p185_p3) target bundleno = 262 (0x106), region = 32  ;;  %839 = vmatprep.subr.bf16.mxu0 (!%p185_p3), %v909_v0  ;;  %877 = vmatprep.subr.bf16.mxu1 (!%p185_p3), %v909_v0  ;;  %vm445_vm0 = vcmask (!%p185_p3), 1041408   ;;  %vm396_vm1 = vcmask (!%p185_p3), 293888   ;;  %v1043_v20 = vld [vmem:[%s1125_s2] ss:$0 sm:$0xff] (!%p185_p3) }
   0x8   : > { %840 = vmatpush3.bf16.msra.mxu0 (!%p185_p3), %v909_v0  ;;  %880 = vmatpush3.bf16.msra.mxu1 (!%p185_p3), %v909_v0  ;;  %v447_v4 = vsel (!%p185_p3), %vm445_vm0, %v911_v2, 0 }
   0x9   : > { %841 = vmatprep.subr.bf16.mxu0 (!%p185_p3), %v910_v1  ;;  %878 = vmatprep.subr.bf16.mxu1 (!%p185_p3), %v910_v1 }
   0xc   : > { %842 = vmatpush3.bf16.msra.mxu0 (!%p185_p3), %v910_v1  ;;  %881 = vmatpush3.bf16.msra.mxu1 (!%p185_p3), %v910_v1 }
   0xd   : > { %883 = vmatprep.subr.msk.bf16.mxu0 (!%p185_p3), %vm445_vm0, %v911_v2  ;;  %884 = vmatprep.subr.msk.bf16.mxu1 (!%p185_p3), %vm445_vm0, %v911_v2 }
   0xe   : > { %s1132_s12 = smov (!%p227_p4, %s942_s12), 1 }
   0xf   : > { %s818_s22 = sshll.u32 %s1132_s12, 7  ;;  %s819_s26 = sshll.u32 %s1132_s12, 8 }
  0x10   : > { %s1005_s25 = scalar_lea.vmem %s1123_s0, %s818_s22  ;;  %844 = vmatpush3.bf16.msra.mxu0 %v447_v4  ;;  %882 = vmatpush3.bf16.msra.mxu1 %v447_v4  ;;  %s1048_s4 = scalar_lea.vmem %s1126_s3, %s819_s26 }
  0x11   : > { %v912_v3 = vld [vmem:[%s1005_s25] sm:$0xff]   ;;  %v914_v6 = vld [vmem:[%s1005_s25 + $0x8] sm:$0xff]   ;;  %v916_v8 = vld [vmem:[%s1005_s25 + $0x10] sm:$0xff]  }
  0x12   : > { %v913_v5 = vld [vmem:[%s1005_s25 + $0x40] sm:$0xff]   ;;  %845 = vmatprep.mubr.msk.bf16.mxu0 %vm396_vm1, %v912_v3  ;;  %v915_v7 = vld [vmem:[%s1005_s25 + $0x48] sm:$0xff]   ;;  %v917_v9 = vld [vmem:[%s1005_s25 + $0x50] sm:$0xff]  }
  0x13   : > { %861 = vmatprep.mubr.msk.bf16.mxu1 %vm396_vm1, %v913_v5  ;;  %846 = vmatmul.mubr.msk.bf16.vlgmr.msra.gmra.mrb[0].mxu0 %vm396_vm1, %v914_v6  ;;  %v918_v10 = vld [vmem:[%s1005_s25 + $0x18] sm:$0xff]   ;;  %v920_v12 = vld [vmem:[%s1005_s25 + $0x20] sm:$0xff]   ;;  %v922_v14 = vld [vmem:[%s1005_s25 + $0x28] sm:$0xff]  }
  0x14   : > { %862 = vmatmul.mubr.msk.bf16.vlgmr.msra.gmra.mrb[0].mxu1 %vm396_vm1, %v915_v7  ;;  %849 = vmatprep.mubr.msk.bf16.mxu0 %vm396_vm1, %v916_v8  ;;  %v919_v11 = vld [vmem:[%s1005_s25 + $0x58] sm:$0xff]   ;;  %v921_v13 = vld [vmem:[%s1005_s25 + $0x60] sm:$0xff]   ;;  %v923_v15 = vld [vmem:[%s1005_s25 + $0x68] sm:$0xff]  }
  0x15   : > { %865 = vmatprep.mubr.msk.bf16.mxu1 %vm396_vm1, %v917_v9  ;;  %v924_v16 = vld [vmem:[%s1005_s25 + $0x30] sm:$0xff]   ;;  %v926_v18 = vld [vmem:[%s1005_s25 + $0x38] sm:$0xff]  }
  0x16   : > { %v925_v17 = vld [vmem:[%s1005_s25 + $0x70] sm:$0xff]   ;;  %v927_v19 = vld [vmem:[%s1005_s25 + $0x78] sm:$0xff]  }
  0x1b   : > { %850 = vmatmul.mubr.msk.bf16.gmra.mrb[4].mxu0 %vm396_vm1, %v918_v10 }
  0x1c   : > { %866 = vmatmul.mubr.msk.bf16.gmra.mrb[4].mxu1 %vm396_vm1, %v919_v11  ;;  %853 = vmatprep.mubr.msk.bf16.mxu0 %vm396_vm1, %v920_v12 }
  0x1d   : > { %869 = vmatprep.mubr.msk.bf16.mxu1 %vm396_vm1, %v921_v13 }
  0x23   : > { %854 = vmatmul.mubr.msk.bf16.gmra.mrb[8].mxu0 %vm396_vm1, %v922_v14 }
  0x24   : > { %870 = vmatmul.mubr.msk.bf16.gmra.mrb[8].mxu1 %vm396_vm1, %v923_v15  ;;  %857 = vmatprep.mubr.msk.bf16.mxu0 %vm396_vm1, %v924_v16 }
  0x25   : > { %873 = vmatprep.mubr.msk.bf16.mxu1 %vm396_vm1, %v925_v17 }
  0x2b   : > { %858 = vmatmul.mubr.msk.bf16.gmra.mrb[12].mxu0 %vm396_vm1, %v926_v18 }
  0x2c   : > { %874 = vmatmul.mubr.msk.bf16.gmra.mrb[12].mxu1 %vm396_vm1, %v927_v19 }
  0xe6   : > { %v847_v21 = vpop.f32.mrb[0].mxu0 }
  0xe7   : > { %v863_v22 = vpop.f32.mrb[0].mxu1  ;;  %v492_v23 = vadd.f32 %v847_v21, %v1043_v20  ;;  %v483_v25 = vpop.f32.mrb[1].mxu0 }
  0xe8   : > { %v556_v24 = vadd.f32 %v863_v22, %v1043_v20  ;;  %v547_v26 = vpop.f32.mrb[1].mxu1  ;;  %v484_v27 = vadd.f32 %v1043_v20, %v483_v25  ;;  %v848_v29 = vpop.f32.mrb[2].mxu0 }
  0xe9   : > { %v548_v28 = vadd.f32 %v1043_v20, %v547_v26  ;;  %v864_v30 = vpop.f32.mrb[2].mxu1  ;;  %612 = vst [vmem:[%s1048_s4 + $0x10] sm:$0xff] %v492_v23  ;;  %v495_v31 = vadd.f32 %v848_v29, %v1043_v20  ;;  %v486_v33 = vpop.f32.mrb[3].mxu0 }
  0xea   : > { %628 = vst [vmem:[%s1048_s4 + $0x90] sm:$0xff] %v556_v24  ;;  %v559_v32 = vadd.f32 %v864_v30, %v1043_v20  ;;  %v550_v34 = vpop.f32.mrb[3].mxu1  ;;  %610 = vst [vmem:[%s1048_s4] sm:$0xff] %v484_v27  ;;  %v487_v35 = vadd.f32 %v1043_v20, %v486_v33 }
  0xeb   : > { %626 = vst [vmem:[%s1048_s4 + $0x80] sm:$0xff] %v548_v28  ;;  %v551_v36 = vadd.f32 %v1043_v20, %v550_v34  ;;  %613 = vst [vmem:[%s1048_s4 + $0x18] sm:$0xff] %v495_v31 }
  0xec   : > { %629 = vst [vmem:[%s1048_s4 + $0x98] sm:$0xff] %v559_v32  ;;  %611 = vst [vmem:[%s1048_s4 + $0x8] sm:$0xff] %v487_v35 }
  0xed   : > { %627 = vst [vmem:[%s1048_s4 + $0x88] sm:$0xff] %v551_v36 }
  0xee   : > { %v851_v37 = vpop.f32.mrb[4].mxu0 }
  0xef   : > { %v867_v38 = vpop.f32.mrb[4].mxu1  ;;  %v508_v39 = vadd.f32 %v851_v37, %v1043_v20  ;;  %v499_v41 = vpop.f32.mrb[5].mxu0 }
  0xf0   : > { %v572_v40 = vadd.f32 %v867_v38, %v1043_v20  ;;  %v563_v42 = vpop.f32.mrb[5].mxu1  ;;  %v500_v43 = vadd.f32 %v1043_v20, %v499_v41  ;;  %v852_v45 = vpop.f32.mrb[6].mxu0 }
  0xf1   : > { %v564_v44 = vadd.f32 %v1043_v20, %v563_v42  ;;  %v868_v46 = vpop.f32.mrb[6].mxu1  ;;  %616 = vst [vmem:[%s1048_s4 + $0x30] sm:$0xff] %v508_v39  ;;  %v511_v47 = vadd.f32 %v852_v45, %v1043_v20  ;;  %v502_v49 = vpop.f32.mrb[7].mxu0 }
  0xf2   : > { %632 = vst [vmem:[%s1048_s4 + $0xb0] sm:$0xff] %v572_v40  ;;  %v575_v48 = vadd.f32 %v868_v46, %v1043_v20  ;;  %v566_v50 = vpop.f32.mrb[7].mxu1  ;;  %614 = vst [vmem:[%s1048_s4 + $0x20] sm:$0xff] %v500_v43  ;;  %v503_v51 = vadd.f32 %v1043_v20, %v502_v49 }
  0xf3   : > { %630 = vst [vmem:[%s1048_s4 + $0xa0] sm:$0xff] %v564_v44  ;;  %v567_v52 = vadd.f32 %v1043_v20, %v566_v50  ;;  %617 = vst [vmem:[%s1048_s4 + $0x38] sm:$0xff] %v511_v47 }
  0xf4   : > { %633 = vst [vmem:[%s1048_s4 + $0xb8] sm:$0xff] %v575_v48  ;;  %615 = vst [vmem:[%s1048_s4 + $0x28] sm:$0xff] %v503_v51 }
  0xf5   : > { %631 = vst [vmem:[%s1048_s4 + $0xa8] sm:$0xff] %v567_v52 }
  0xf6   : > { %v855_v53 = vpop.f32.mrb[8].mxu0 }
  0xf7   : > { %v871_v54 = vpop.f32.mrb[8].mxu1  ;;  %v524_v55 = vadd.f32 %v855_v53, %v1043_v20  ;;  %v515_v57 = vpop.f32.mrb[9].mxu0 }
  0xf8   : > { %v588_v56 = vadd.f32 %v871_v54, %v1043_v20  ;;  %v579_v58 = vpop.f32.mrb[9].mxu1  ;;  %v516_v59 = vadd.f32 %v1043_v20, %v515_v57  ;;  %v856_v61 = vpop.f32.mrb[10].mxu0 }
  0xf9   : > { %v580_v60 = vadd.f32 %v1043_v20, %v579_v58  ;;  %v872_v62 = vpop.f32.mrb[10].mxu1  ;;  %620 = vst [vmem:[%s1048_s4 + $0x50] sm:$0xff] %v524_v55  ;;  %v527_v63 = vadd.f32 %v856_v61, %v1043_v20  ;;  %v518_v1 = vpop.f32.mrb[11].mxu0 }
  0xfa   : > { %636 = vst [vmem:[%s1048_s4 + $0xd0] sm:$0xff] %v588_v56  ;;  %v591_v0 = vadd.f32 %v872_v62, %v1043_v20  ;;  %v582_v2 = vpop.f32.mrb[11].mxu1  ;;  %618 = vst [vmem:[%s1048_s4 + $0x40] sm:$0xff] %v516_v59  ;;  %v519_v3 = vadd.f32 %v1043_v20, %v518_v1 }
  0xfb   : > { %634 = vst [vmem:[%s1048_s4 + $0xc0] sm:$0xff] %v580_v60  ;;  %v583_v4 = vadd.f32 %v1043_v20, %v582_v2  ;;  %621 = vst [vmem:[%s1048_s4 + $0x58] sm:$0xff] %v527_v63 }
  0xfc   : > { %637 = vst [vmem:[%s1048_s4 + $0xd8] sm:$0xff] %v591_v0  ;;  %619 = vst [vmem:[%s1048_s4 + $0x48] sm:$0xff] %v519_v3 }
  0xfd   : > { %635 = vst [vmem:[%s1048_s4 + $0xc8] sm:$0xff] %v583_v4 }
  0xfe   : > { %v859_v5 = vpop.f32.mrb[12].mxu0 }
  0xff   : > { %v875_v6 = vpop.f32.mrb[12].mxu1  ;;  %v540_v7 = vadd.f32 %v859_v5, %v1043_v20  ;;  %v531_v9 = vpop.f32.mrb[13].mxu0 }
 0x100   : > { %v604_v8 = vadd.f32 %v875_v6, %v1043_v20  ;;  %v595_v10 = vpop.f32.mrb[13].mxu1  ;;  %v532_v11 = vadd.f32 %v1043_v20, %v531_v9  ;;  %v860_v13 = vpop.f32.mrb[14].mxu0 }
 0x101   : > { %v596_v12 = vadd.f32 %v1043_v20, %v595_v10  ;;  %v876_v14 = vpop.f32.mrb[14].mxu1  ;;  %624 = vst [vmem:[%s1048_s4 + $0x70] sm:$0xff] %v540_v7  ;;  %v543_v15 = vadd.f32 %v860_v13, %v1043_v20  ;;  %v534_v17 = vpop.f32.mrb[15].mxu0 }
 0x102   : > { %640 = vst [vmem:[%s1048_s4 + $0xf0] sm:$0xff] %v604_v8  ;;  %v607_v16 = vadd.f32 %v876_v14, %v1043_v20  ;;  %v598_v18 = vpop.f32.mrb[15].mxu1  ;;  %622 = vst [vmem:[%s1048_s4 + $0x60] sm:$0xff] %v532_v11  ;;  %v535_v19 = vadd.f32 %v1043_v20, %v534_v17 }
 0x103   : > { %638 = vst [vmem:[%s1048_s4 + $0xe0] sm:$0xff] %v596_v12  ;;  %v599_v21 = vadd.f32 %v1043_v20, %v598_v18  ;;  %625 = vst [vmem:[%s1048_s4 + $0x78] sm:$0xff] %v543_v15 }
 0x104   : > { %641 = vst [vmem:[%s1048_s4 + $0xf8] sm:$0xff] %v607_v16  ;;  %623 = vst [vmem:[%s1048_s4 + $0x68] sm:$0xff] %v535_v19 }
 0x105   : > { %639 = vst [vmem:[%s1048_s4 + $0xe8] sm:$0xff] %v599_v21 }
 0x106 PF: > { %s13_s14 = sadd.s32 1, %s950_s14   ;;  %s1127_s12 = smov %s946_s13 }
 0x107   : > { %p10_p5 = scmp.ge.s32.totalorder %s13_s14, 4   ;;  %s1128_s13 = smov %s1130_s15 }
 0x109   :  { %12 = sbr.rel (!%p10_p5) target bundleno = 2 (0x2), region = 68 }

</bundles_post_ra>
